<compile_context>
chip_gen: v5e
topology: v5e:2x2
jax: 0.10.0
libtpu: 0.0.40
codegen_flags: <defaults>
</compile_context>

<pallas_src>
import jax
import jax.numpy as jnp
import numpy as np
from jax.experimental import pallas as pl
from jax.experimental.pallas import tpu as pltpu

_EPS = 1e-5
# Full-block f32 temporaries budgeted for the kernel body (f32 cast, masked
# copy, centered copy, squared copy, output staging, slack).
_BODY_TEMPS_F32 = 6


# --------------------------------------------------------------------------
# VMEM budgeting (generation-aware)
# --------------------------------------------------------------------------
def _vmem_capacity_bytes():
    """Per-TensorCore VMEM capacity; conservative 64 MiB if the query fails."""
    try:
        cap = int(pltpu.get_tpu_info().vmem_capacity_bytes)
        if cap > 0:
            return cap
    except Exception:
        pass
    return 64 << 20


def _budgets():
    cap = _vmem_capacity_bytes()
    # Working-set budget used to pick block sizes, and the hard limit handed
    # to Mosaic: ~24 / 40 MiB on 64-MiB v7x cores, 40 / 48 MiB on 128-MiB
    # v5e / v6e parts.
    budget = max(min((cap * 3) // 8, 40 << 20), 8 << 20)
    limit_cap = max(min((cap * 5) // 8, 48 << 20), 16 << 20)
    return budget, limit_cap


def _per_channel_bytes(B, T, io_itemsize):
    # 2x double-buffered input block + 2x double-buffered output block at the
    # I/O dtype, plus the in-body f32 temporaries.
    return B * T * (4 * io_itemsize + _BODY_TEMPS_F32 * 4)


def _pick_block_c(B, C, T, io_itemsize, budget_bytes, c_mult, min_grid=4):
    per_ch = _per_channel_bytes(B, T, io_itemsize)
    max_bc = max(1, budget_bytes // per_ch)
    # Keep at least `min_grid` channel blocks when C permits: gives the
    # "parallel" axis work for both v7x TensorCores and keeps the pipeline
    # double-buffering across blocks.
    target = max(C // min_grid, c_mult)
    bc = (min(max_bc, target, C) // c_mult) * c_mult
    while bc >= c_mult:
        if C % bc == 0:
            return bc
        bc -= c_mult
    # Even `c_mult` channels blow the budget (huge B*T), or no multiple of
    # c_mult divides C: fall back to the smallest *legal* sublane block —
    # never the full channel dim — and let the caller tile T if needed.
    return c_mult if (C % c_mult == 0) else C


def _pick_block_t(B, block_c, T, io_itemsize, budget_bytes):
    """Largest T tile (multiple of 128, divides T) whose working set fits."""
    if T % 128 != 0:
        # TODO(synk): for ragged very-long T, pad T to a 128 multiple on the
        # wrapper side (lane-dense stores and enables T tiling).
        return T
    per_t = B * block_c * (4 * io_itemsize + _BODY_TEMPS_F32 * 4)
    bt = min(max(128, (budget_bytes // per_t) // 128 * 128), T)
    while bt >= 128:
        if T % bt == 0:
            return bt
        bt -= 128
    return T


# --------------------------------------------------------------------------
# Kernels
# --------------------------------------------------------------------------
def _make_train_kernel_full_t(momentum):
    """Training kernel, whole T resident per channel block.  Two-pass
    (centered) statistics: robust against catastrophic cancellation, and the
    centered tensor is reused so the normalize itself is a single multiply."""

    def kernel(n_ref, mask_ref, x_ref, rm_ref, rs_ref,
               out_ref, new_rm_ref, new_rs_ref):
        # x_ref: (B, bc, T) io-dtype; mask_ref: (B, T) f32 (1 = valid frame);
        # n_ref: (1,) f32 in SMEM; rm/rs: (1, bc, 1) f32.
        x = x_ref[...].astype(jnp.float32)
        n = n_ref[0]
        valid = (mask_ref[...] != 0.0)[:, None, :]            # (B, 1, T)

        # Pass 1: masked mean.  jnp.where (not x*mask) so NaN/Inf in padded
        # frames cannot poison the statistics.
        xm = jnp.where(valid, x, 0.0)
        mean = jnp.sum(xm, axis=(0, 2), keepdims=True) / n    # (1, bc, 1)

        # Pass 2 (in-VMEM, no extra HBM traffic): centered second moment,
        # torch.std semantics (unbiased, N-1).
        d = x - mean
        dm = jnp.where(valid, d, 0.0)
        var = jnp.sum(dm * dm, axis=(0, 2), keepdims=True) / (n - 1.0)
        std = jnp.sqrt(var)

        inv = 1.0 / (std + _EPS)                 # tiny per-channel divide
        out_ref[...] = (d * inv).astype(out_ref.dtype)   # one mul/element
        new_rm_ref[...] = (1.0 - momentum) * rm_ref[...] + momentum * mean
        new_rs_ref[...] = (1.0 - momentum) * rs_ref[...] + momentum * std

    return kernel


def _make_train_kernel_tiled_t(momentum):
    """Training kernel for very large B*T: grid = (C/bc, 2, T/bt).  Sweep 0
    accumulates masked sufficient statistics (s1, s2) into VMEM scratch,
    sweep 1 normalizes and writes the output / updated running stats."""

    def kernel(n_ref, mask_ref, x_ref, rm_ref, rs_ref,
               out_ref, new_rm_ref, new_rs_ref, s1_ref, s2_ref):
        phase = pl.program_id(1)
        t = pl.program_id(2)
        last_t = pl.num_programs(2) - 1

        x = x_ref[...].astype(jnp.float32)                    # (B, bc, bt)

        @pl.when((phase == 0) & (t == 0))
        def _init():
            s1_ref[...] = jnp.zeros_like(s1_ref)
            s2_ref[...] = jnp.zeros_like(s2_ref)

        @pl.when(phase == 0)
        def _accumulate():
            valid = (mask_ref[...] != 0.0)[:, None, :]        # (B, 1, bt)
            xm = jnp.where(valid, x, 0.0)                     # NaN-safe mask
            s1_ref[...] += jnp.sum(xm, axis=(0, 2), keepdims=True)
            s2_ref[...] += jnp.sum(xm * xm, axis=(0, 2), keepdims=True)

        # Tiny (1, bc, 1) statistics; only meaningful during sweep 1.
        n = n_ref[0]
        s1 = s1_ref[...]
        mean = s1 / n
        var = jnp.maximum((s2_ref[...] - s1 * mean) / (n - 1.0), 0.0)
        std = jnp.sqrt(var)
        inv = 1.0 / (std + _EPS)
        shift = -mean * inv

        @pl.when(phase == 1)
        def _normalize():
            out_ref[...] = (x * inv + shift).astype(out_ref.dtype)

        @pl.when((phase == 1) & (t == last_t))
        def _running_stats():
            new_rm_ref[...] = (1.0 - momentum) * rm_ref[...] + momentum * mean
            new_rs_ref[...] = (1.0 - momentum) * rs_ref[...] + momentum * std

    return kernel


def _eval_kernel(x_ref, inv_ref, shift_ref, out_ref):
    # Running stats are folded into inv / shift by the wrapper:
    # (x - rm) / (rs + eps) == x * inv + shift  -> one multiply-add / element.
    x = x_ref[...].astype(jnp.float32)
    out_ref[...] = (x * inv_ref[...] + shift_ref[...]).astype(out_ref.dtype)


# --------------------------------------------------------------------------
# Wrapper
# --------------------------------------------------------------------------
def my_normalize(x, seq_len, running_mean, running_std, *,
                 momentum=0.1, training=True, block_c=None, block_t=None):
    """Pallas implementation of MyNormalize.forward.

    x:            (B, C, T) float32 or bfloat16
    seq_len:      (B,) integer valid lengths
    running_mean: (1, C, 1) float32
    running_std:  (1, C, 1) float32

    Returns (out, new_running_mean, new_running_std); in eval mode the
    running stats are returned unchanged.  `out` has x.dtype.
    """
    B, C, T = x.shape
    io_itemsize = jnp.dtype(x.dtype).itemsize
    c_mult = max(8, 32 // io_itemsize)            # 8 for f32, 16 for bf16
    budget, limit_cap = _budgets()

    if block_c is None:
        block_c = _pick_block_c(B, C, T, io_itemsize, budget, c_mult)
    if C % block_c != 0 or not (block_c % c_mult == 0 or block_c == C):
        raise ValueError(f"block_c={block_c} must divide C={C} and be a "
                         f"multiple of {c_mult} (or equal C)")

    whole_t_bytes = block_c * _per_channel_bytes(B, T, io_itemsize)
    if block_t is None:
        block_t = T if whole_t_bytes <= budget else _pick_block_t(
            B, block_c, T, io_itemsize, budget)
    if T % block_t != 0 or not (block_t % 128 == 0 or block_t == T):
        raise ValueError(f"block_t={block_t} must divide T={T} and be a "
                         f"multiple of 128 (or equal T)")

    rm = running_mean.astype(jnp.float32)
    rs = running_std.astype(jnp.float32)

    def vmem_limit(ws_bytes):
        return int(min(max(ws_bytes + (2 << 20), 16 << 20), limit_cap))

    if not training:
        inv = 1.0 / (rs + _EPS)                  # fold stats in the wrapper
        shift = -rm * inv
        grid = (C // block_c, T // block_t)
        x_spec = pl.BlockSpec((B, block_c, block_t), lambda c, t: (0, c, t))
        stat_spec = pl.BlockSpec((1, block_c, 1), lambda c, t: (0, c, 0))
        ws = B * block_c * block_t * (4 * io_itemsize + 3 * 4)
        out = pl.pallas_call(
            _eval_kernel,
            grid=grid,
            out_shape=jax.ShapeDtypeStruct((B, C, T), x.dtype),
            in_specs=[x_spec, stat_spec, stat_spec],
            out_specs=x_spec,
            compiler_params=pltpu.CompilerParams(
                dimension_semantics=("parallel", "parallel"),
                vmem_limit_bytes=vmem_limit(ws)),
        )(x, inv, shift)
        return out, running_mean, running_std

    # Training: the (B, T) valid-frame mask and total frame count N are built
    # once in the wrapper (hoisted out of the per-block kernel body).
    maskf = (jnp.arange(T, dtype=jnp.int32)[None, :]
             < seq_len.astype(jnp.int32)[:, None]).astype(jnp.float32)
    n = jnp.sum(seq_len).astype(jnp.float32).reshape(1)
    n_spec = pl.BlockSpec(memory_space=pltpu.MemorySpace.SMEM)
    out_shapes = (jax.ShapeDtypeStruct((B, C, T), x.dtype),
                  jax.ShapeDtypeStruct((1, C, 1), jnp.float32),
                  jax.ShapeDtypeStruct((1, C, 1), jnp.float32))

    if block_t == T:
        # Common case: whole T resident -> robust two-pass statistics.
        grid = (C // block_c,)
        x_spec = pl.BlockSpec((B, block_c, T), lambda c: (0, c, 0))
        stat_spec = pl.BlockSpec((1, block_c, 1), lambda c: (0, c, 0))
        mask_spec = pl.BlockSpec((B, T), lambda c: (0, 0))   # DMA'd once
        ws = whole_t_bytes + 2 * B * T * 4
        out, new_rm, new_rs = pl.pallas_call(
            _make_train_kernel_full_t(momentum),
            grid=grid,
            out_shape=out_shapes,
            in_specs=[n_spec, mask_spec, x_spec, stat_spec, stat_spec],
            out_specs=(x_spec, stat_spec, stat_spec),
            compiler_params=pltpu.CompilerParams(
                dimension_semantics=("parallel",),
                vmem_limit_bytes=vmem_limit(ws)),
        )(n, maskf, x, rm, rs)
    else:
        # Huge B*T: second grid axis over T, two sweeps (stats, normalize).
        grid = (C // block_c, 2, T // block_t)
        x_spec = pl.BlockSpec((B, block_c, block_t),
                              lambda c, p, t: (0, c, t))
        # Sweep 0 parks the output on block (0, c, 0) and never writes it
        # (no garbage HBM traffic); sweep 1 streams the real blocks.
        out_spec = pl.BlockSpec((B, block_c, block_t),
                                lambda c, p, t: (0, c, t * p))
        stat_spec = pl.BlockSpec((1, block_c, 1), lambda c, p, t: (0, c, 0))
        mask_spec = pl.BlockSpec((B, block_t), lambda c, p, t: (0, t))
        ws = (block_c * _per_channel_bytes(B, block_t, io_itemsize)
              + 2 * B * block_t * 4)
        out, new_rm, new_rs = pl.pallas_call(
            _make_train_kernel_tiled_t(momentum),
            grid=grid,
            out_shape=out_shapes,
            in_specs=[n_spec, mask_spec, x_spec, stat_spec, stat_spec],
            out_specs=(out_spec, stat_spec, stat_spec),
            scratch_shapes=[pltpu.VMEM((1, block_c, 1), jnp.float32),
                            pltpu.VMEM((1, block_c, 1), jnp.float32)],
            compiler_params=pltpu.CompilerParams(
                dimension_semantics=("parallel", "arbitrary", "arbitrary"),
                vmem_limit_bytes=vmem_limit(ws)),
        )(n, maskf, x, rm, rs)
    return out, new_rm, new_rs


# --------------------------------------------------------------------------
# Reference + self-test
# --------------------------------------------------------------------------
def _reference(x, seq_len, rm, rs, momentum):
    """Pure-numpy reference reproducing the PyTorch training forward."""
    x = np.asarray(x, np.float32)
    B, C, T = x.shape
    mask = np.arange(T)[None, :] < np.asarray(seq_len)[:, None]      # (B, T)
    cat = x.transpose(1, 0, 2)[:, mask]                              # (C, Nv)
    mean = cat.mean(axis=1).reshape(1, C, 1)
    std = cat.std(axis=1, ddof=1).reshape(1, C, 1)
    out = (x - mean) / (std + _EPS)
    new_rm = (1.0 - momentum) * np.asarray(rm) + momentum * mean
    new_rs = (1.0 - momentum) * np.asarray(rs) + momentum * std
    return out, new_rm, new_rs


if __name__ == "__main__":
    B, C, T = 2, 16, 256          # MyNormalize(size=C); T lane-dense
    momentum = 0.1

    key = jax.random.PRNGKey(0)
    x = jax.random.normal(key, (B, C, T), dtype=jnp.float32)
    seq_len = jnp.array([200, 256], dtype=jnp.int32)
    running_mean = jnp.zeros((1, C, 1), jnp.float32)
    running_std = jnp.zeros((1, C, 1), jnp.float32)

    ref_out, ref_rm, ref_rs = _reference(x, seq_len, running_mean,
                                         running_std, momentum)

    # 1) Training forward, auto-tiled (whole-T two-pass kernel, grid over C).
    out, new_rm, new_rs = my_normalize(
        x, seq_len, running_mean, running_std,
        momentum=momentum, training=True)
    jax.block_until_ready((out, new_rm, new_rs))
    np.testing.assert_allclose(np.asarray(out), ref_out, rtol=1e-4, atol=1e-4)
    np.testing.assert_allclose(np.asarray(new_rm), ref_rm, rtol=1e-4, atol=1e-4)
    np.testing.assert_allclose(np.asarray(new_rs), ref_rs, rtol=1e-4, atol=1e-4)

    # 2) Training forward, forced T-tiled two-sweep path (grid = (2, 2, 2)).
    out_t, rm_t, rs_t = my_normalize(
        x, seq_len, running_mean, running_std,
        momentum=momentum, training=True, block_c=8, block_t=128)
    jax.block_until_ready((out_t, rm_t, rs_t))
    np.testing.assert_allclose(np.asarray(out_t), ref_out, rtol=1e-4, atol=1e-4)
    np.testing.assert_allclose(np.asarray(rm_t), ref_rm, rtol=1e-4, atol=1e-4)
    np.testing.assert_allclose(np.asarray(rs_t), ref_rs, rtol=1e-4, atol=1e-4)

    # 3) Eval forward (running stats folded into a fused multiply-add).
    out_eval, _, _ = my_normalize(
        x, seq_len, new_rm, new_rs, momentum=momentum, training=False)
    jax.block_until_ready(out_eval)
    ref_eval = (np.asarray(x) - ref_rm) / (ref_rs + _EPS)
    np.testing.assert_allclose(np.asarray(out_eval), ref_eval,
                               rtol=1e-4, atol=1e-4)

    # 4) bf16 I/O path (halves HBM traffic; stats still accumulate in f32).
    xb = x.astype(jnp.bfloat16)
    out_b, _, _ = my_normalize(
        xb, seq_len, running_mean, running_std,
        momentum=momentum, training=True)
    jax.block_until_ready(out_b)
    assert out_b.dtype == jnp.bfloat16
    np.testing.assert_allclose(np.asarray(out_b.astype(jnp.float32)), ref_out,
                               rtol=5e-2, atol=5e-2)

    print("KERNEL_OK")
</pallas_src>

<mosaic_0001>
module attributes {stable_mosaic.version = 11 : i64} {
  func.func @kernel(%arg0: i32, %arg1: memref<1xf32, #tpu.memory_space<smem>>, %arg2: memref<2x256xf32, #tpu.memory_space<vmem>>, %arg3: memref<2x8x256xf32, #tpu.memory_space<vmem>>, %arg4: memref<1x8x1xf32, #tpu.memory_space<vmem>>, %arg5: memref<1x8x1xf32, #tpu.memory_space<vmem>>, %arg6: memref<2x8x256xf32, #tpu.memory_space<vmem>>, %arg7: memref<1x8x1xf32, #tpu.memory_space<vmem>>, %arg8: memref<1x8x1xf32, #tpu.memory_space<vmem>>) attributes {dimension_semantics = [#tpu.dimension_semantics<parallel>], iteration_bounds = array<i64: 2>, scalar_prefetch = 0 : i64, scratch_operands = 0 : i64, tpu.core_type = #tpu.core_type<tc>, window_params = [{transform_indices = @transform_0, window_bounds = array<i64: 1>}, {pipeline_mode = #tpu.pipeline_mode<synchronous>, transform_indices = @transform_1, window_bounds = array<i64: 2, 256>}, {transform_indices = @transform_2, window_bounds = array<i64: 2, 8, 256>}, {transform_indices = @transform_3, window_bounds = array<i64: 1, 8, 1>}, {transform_indices = @transform_4, window_bounds = array<i64: 1, 8, 1>}, {transform_indices = @transform_5, window_bounds = array<i64: 2, 8, 256>}, {transform_indices = @transform_6, window_bounds = array<i64: 1, 8, 1>}, {transform_indices = @transform_7, window_bounds = array<i64: 1, 8, 1>}]} {
    %c0 = arith.constant 0 : index
    %c0_0 = arith.constant 0 : index
    %c0_1 = arith.constant 0 : index
    %0 = vector.load %arg3[%c0, %c0_0, %c0_1] : memref<2x8x256xf32, #tpu.memory_space<vmem>>, vector<2x8x256xf32>
    %c0_2 = arith.constant 0 : index
    %1 = memref.load %arg1[%c0_2] : memref<1xf32, #tpu.memory_space<smem>>
    %c0_3 = arith.constant 0 : index
    %c0_4 = arith.constant 0 : index
    %2 = vector.load %arg2[%c0_3, %c0_4] : memref<2x256xf32, #tpu.memory_space<vmem>>, vector<2x256xf32>
    %cst = arith.constant 0.000000e+00 : f32
    %3 = vector.broadcast %cst : f32 to vector<2x256xf32>
    %4 = arith.cmpf one, %2, %3 : vector<2x256xf32>
    %5 = vector.shape_cast %4 : vector<2x256xi1> to vector<2x1x256xi1>
    %cst_5 = arith.constant 0.000000e+00 : f32
    %6 = vector.shape_cast %5 : vector<2x1x256xi1> to vector<2x1x256xi1>
    %7 = vector.broadcast %6 : vector<2x1x256xi1> to vector<2x8x256xi1>
    %8 = vector.broadcast %cst_5 : f32 to vector<2x8x256xf32>
    %9 = arith.select %7, %0, %8 : vector<2x8x256xi1>, vector<2x8x256xf32>
    %cst_6 = arith.constant dense<0.000000e+00> : vector<8xf32>
    %10 = vector.multi_reduction <add>, %9, %cst_6 [0, 2] : vector<2x8x256xf32> to vector<8xf32>
    %11 = vector.shape_cast %10 : vector<8xf32> to vector<1x8x1xf32>
    %12 = vector.broadcast %1 : f32 to vector<1x8x1xf32>
    %13 = arith.divf %11, %12 : vector<1x8x1xf32>
    %14 = vector.broadcast %13 : vector<1x8x1xf32> to vector<2x8x256xf32>
    %15 = arith.subf %0, %14 : vector<2x8x256xf32>
    %cst_7 = arith.constant 0.000000e+00 : f32
    %16 = vector.shape_cast %5 : vector<2x1x256xi1> to vector<2x1x256xi1>
    %17 = vector.broadcast %16 : vector<2x1x256xi1> to vector<2x8x256xi1>
    %18 = vector.broadcast %cst_7 : f32 to vector<2x8x256xf32>
    %19 = arith.select %17, %15, %18 : vector<2x8x256xi1>, vector<2x8x256xf32>
    %20 = arith.mulf %19, %19 : vector<2x8x256xf32>
    %cst_8 = arith.constant dense<0.000000e+00> : vector<8xf32>
    %21 = vector.multi_reduction <add>, %20, %cst_8 [0, 2] : vector<2x8x256xf32> to vector<8xf32>
    %22 = vector.shape_cast %21 : vector<8xf32> to vector<1x8x1xf32>
    %cst_9 = arith.constant 1.000000e+00 : f32
    %23 = arith.subf %1, %cst_9 : f32
    %24 = vector.broadcast %23 : f32 to vector<1x8x1xf32>
    %25 = arith.divf %22, %24 : vector<1x8x1xf32>
    %26 = math.sqrt %25 : vector<1x8x1xf32>
    %cst_10 = arith.constant 9.99999974E-6 : f32
    %27 = vector.broadcast %cst_10 : f32 to vector<1x8x1xf32>
    %28 = arith.addf %26, %27 : vector<1x8x1xf32>
    %cst_11 = arith.constant 1.000000e+00 : f32
    %29 = vector.broadcast %cst_11 : f32 to vector<1x8x1xf32>
    %30 = arith.divf %29, %28 : vector<1x8x1xf32>
    %31 = vector.broadcast %30 : vector<1x8x1xf32> to vector<2x8x256xf32>
    %32 = arith.mulf %15, %31 : vector<2x8x256xf32>
    %c0_12 = arith.constant 0 : index
    %c0_13 = arith.constant 0 : index
    %c0_14 = arith.constant 0 : index
    %33 = vector.load %arg6[%c0_12, %c0_13, %c0_14] : memref<2x8x256xf32, #tpu.memory_space<vmem>>, vector<2x8x256xf32>
    tpu.vector_store %arg6[%c0_12, %c0_13, %c0_14], %32 {strides = array<i32>} : memref<2x8x256xf32, #tpu.memory_space<vmem>>, vector<2x8x256xf32>,
    %c0_15 = arith.constant 0 : index
    %c0_16 = arith.constant 0 : index
    %c0_17 = arith.constant 0 : index
    %34 = vector.load %arg4[%c0_15, %c0_16, %c0_17] : memref<1x8x1xf32, #tpu.memory_space<vmem>>, vector<1x8x1xf32>
    %cst_18 = arith.constant 0.899999976 : f32
    %35 = vector.broadcast %cst_18 : f32 to vector<1x8x1xf32>
    %36 = arith.mulf %35, %34 : vector<1x8x1xf32>
    %cst_19 = arith.constant 1.000000e-01 : f32
    %37 = vector.broadcast %cst_19 : f32 to vector<1x8x1xf32>
    %38 = arith.mulf %37, %13 : vector<1x8x1xf32>
    %39 = arith.addf %36, %38 : vector<1x8x1xf32>
    %c0_20 = arith.constant 0 : index
    %c0_21 = arith.constant 0 : index
    %c0_22 = arith.constant 0 : index
    %40 = vector.load %arg7[%c0_20, %c0_21, %c0_22] : memref<1x8x1xf32, #tpu.memory_space<vmem>>, vector<1x8x1xf32>
    tpu.vector_store %arg7[%c0_20, %c0_21, %c0_22], %39 {strides = array<i32>} : memref<1x8x1xf32, #tpu.memory_space<vmem>>, vector<1x8x1xf32>,
    %c0_23 = arith.constant 0 : index
    %c0_24 = arith.constant 0 : index
    %c0_25 = arith.constant 0 : index
    %41 = vector.load %arg5[%c0_23, %c0_24, %c0_25] : memref<1x8x1xf32, #tpu.memory_space<vmem>>, vector<1x8x1xf32>
    %cst_26 = arith.constant 0.899999976 : f32
    %42 = vector.broadcast %cst_26 : f32 to vector<1x8x1xf32>
    %43 = arith.mulf %42, %41 : vector<1x8x1xf32>
    %cst_27 = arith.constant 1.000000e-01 : f32
    %44 = vector.broadcast %cst_27 : f32 to vector<1x8x1xf32>
    %45 = arith.mulf %44, %26 : vector<1x8x1xf32>
    %46 = arith.addf %43, %45 : vector<1x8x1xf32>
    %c0_28 = arith.constant 0 : index
    %c0_29 = arith.constant 0 : index
    %c0_30 = arith.constant 0 : index
    %47 = vector.load %arg8[%c0_28, %c0_29, %c0_30] : memref<1x8x1xf32, #tpu.memory_space<vmem>>, vector<1x8x1xf32>
    tpu.vector_store %arg8[%c0_28, %c0_29, %c0_30], %46 {strides = array<i32>} : memref<1x8x1xf32, #tpu.memory_space<vmem>>, vector<1x8x1xf32>,
    return
  }
  func.func @transform_0(%arg0: i32) -> i32 {
    %c0_i32 = arith.constant 0 : i32
    %c0_i32_0 = arith.constant 0 : i32
    return %c0_i32 : i32
  }
  func.func @transform_1(%arg0: i32) -> (i32, i32) {
    %c0_i32 = arith.constant 0 : i32
    %c0_i32_0 = arith.constant 0 : i32
    %c0_i32_1 = arith.constant 0 : i32
    return %c0_i32, %c0_i32_0 : i32, i32
  }
  func.func @transform_2(%arg0: i32) -> (i32, i32, i32) {
    %c0_i32 = arith.constant 0 : i32
    %c0_i32_0 = arith.constant 0 : i32
    %c0_i32_1 = arith.constant 0 : i32
    return %c0_i32, %arg0, %c0_i32_0 : i32, i32, i32
  }
  func.func @transform_3(%arg0: i32) -> (i32, i32, i32) {
    %c0_i32 = arith.constant 0 : i32
    %c0_i32_0 = arith.constant 0 : i32
    %c0_i32_1 = arith.constant 0 : i32
    return %c0_i32, %arg0, %c0_i32_0 : i32, i32, i32
  }
  func.func @transform_4(%arg0: i32) -> (i32, i32, i32) {
    %c0_i32 = arith.constant 0 : i32
    %c0_i32_0 = arith.constant 0 : i32
    %c0_i32_1 = arith.constant 0 : i32
    return %c0_i32, %arg0, %c0_i32_0 : i32, i32, i32
  }
  func.func @transform_5(%arg0: i32) -> (i32, i32, i32) {
    %c0_i32 = arith.constant 0 : i32
    %c0_i32_0 = arith.constant 0 : i32
    %c0_i32_1 = arith.constant 0 : i32
    return %c0_i32, %arg0, %c0_i32_0 : i32, i32, i32
  }
  func.func @transform_6(%arg0: i32) -> (i32, i32, i32) {
    %c0_i32 = arith.constant 0 : i32
    %c0_i32_0 = arith.constant 0 : i32
    %c0_i32_1 = arith.constant 0 : i32
    return %c0_i32, %arg0, %c0_i32_0 : i32, i32, i32
  }
  func.func @transform_7(%arg0: i32) -> (i32, i32, i32) {
    %c0_i32 = arith.constant 0 : i32
    %c0_i32_0 = arith.constant 0 : i32
    %c0_i32_1 = arith.constant 0 : i32
    return %c0_i32, %arg0, %c0_i32_0 : i32, i32, i32
  }
}

</mosaic_0001>

<bundles_post_ra>
// kernel: tpu_custom_call.1
= control target key start
LH: loop header
LB: loop body
LE: loop exit
PB: predicated region body
PF: predicated region fallthrough
CT: control target
= control target key end

     0   :  { %s1114_s0 = inlined_call_operand.<no memory space> [shape: f32[1], index: 0, kind: input, shape index: {}]   ;;  %s1115_s1 = inlined_call_operand.vmem [shape: f32[2,256], index: 1, kind: input, shape index: {}]   ;;  %s1116_s2 = inlined_call_operand.hbm [shape: f32[2,16,256], index: 2, kind: input, shape index: {}]   ;;  %s1117_s3 = inlined_call_operand.vmem [shape: f32[1,16,1], index: 3, kind: input, shape index: {}]   ;;  %s1118_s4 = inlined_call_operand.vmem [shape: f32[1,16,1], index: 4, kind: input, shape index: {}]   ;;  %s1119_s5 = inlined_call_operand.hbm [shape: f32[2,16,256], index: 5, kind: output, shape index: {0}]   ;;  %s1120_s6 = inlined_call_operand.vmem [shape: f32[1,16,1], index: 6, kind: output, shape index: {1}]   ;;  %s1121_s7 = inlined_call_operand.vmem [shape: f32[1,16,1], index: 7, kind: output, shape index: {2}]  }
   0x1   :  { %13 = sst [smem:[#allocation2]] %s1114_s0 }
   0x2   :  { %14 = vsyncpa [#allocation4], 0 }
   0x3   :  { %16 = vsyncpa [#allocation4 + $0x1], 0 }
   0x4   :  { %17 = vsyncpa [#allocation5], 0 }
   0x5   :  { %19 = vsyncpa [#allocation5 + $0x1], 0  ;;  %s902_s26 = smov 0   ;;  %s904_s27 = smov 0  }
   0x6   :  { %s906_s28 = smov 0   ;;  %s908_s29 = smov 0  }
   0x7 LB: > { %s923_s0 = sadd.s32 4294967295, %s850_s29   ;;  %s672_s30 = sadd.s32 4294967294, %s850_s29   ;;  %s850_s29 = sphi %s908_s29, %s1138_s29   ;;  %s846_s28 = sphi %s906_s28, %s1137_s28   ;;  %s842_s27 = sphi %s904_s27, %s1136_s27   ;;  %s838_s26 = sphi %s902_s26, %s1135_s26  }
   0x8   : > { %s927_s8 = sadd.s32 1, %s850_s29   ;;  %s74_s9 = sadd.s32 1, %s846_s28 }
   0x9   : > { %s71_s10 = ssub.s32 %s850_s29, %s927_s8  ;;  %p81_p0 = scmp.ne.s32.totalorder %s846_s28, %s842_s27 }
   0xa   : > { %p72_p1 = scmp.eq.s32.totalorder %s71_s10, 0  ;;  %p82_p2 = scmp.eq.s32.totalorder %s850_s29, 0 }
   0xb   : > { %p87_p3 = scmp.ne.s32.totalorder %s842_s27, %s838_s26  ;;  %p88_p4 = scmp.eq.s32.totalorder %s923_s0, 0 }
   0xc   : > { %s939_s11 = scalar_select %p72_p1, %s846_s28, %s74_s9  }
   0xd   : > { %p941_p5 = por %p82_p2, %p81_p0  ;;  %p945_p6 = por %p88_p4, %p87_p3 }
   0xe   : > { %p163_p7 = scmp.eq.s32.totalorder %s923_s0, 1  ;;  %p169_p8 = scmp.eq.s32.totalorder %s672_s30, 1 }
   0xf   : > { %p674_p9 = scmp.ge.s32.totalorder %s850_s29, 2  ;;  %p705_p10 = scmp.lt.s32.totalorder %s850_s29, 2 }
  0x10   : > { %p952_p11 = por %p163_p7, %p81_p0  ;;  %p956_p12 = por %p169_p8, %p87_p3 }
  0x11   : > { %s247_s16 = sand.u32 1, %s846_s28   ;;  %s691_s17 = sshll.u32 %s850_s29, 4 }
  0x12   : > { %s675_s18 = sshll.u32 %s247_s16, 5  ;;  %s256_s21 = scalar_lea.hbm %s1116_s2, %s691_s17 }
  0x13   : > { %s257_s22 = sshll.u32 %s256_s21, 4  ;;  %s251_s23 = scalar_lea.vmem [#allocation3], %s675_s18  ;;  %s258_s22 = int_to_ptr.hbm [resolvable:$true] %s257_s22 }
  0x14   : > { %s259_s24 = sshll.u32 %s251_s23, 4  ;;  %p967_p13 = pnand %p705_p10, %p941_p5  ;;  %s260_s24 = int_to_ptr.vmem [resolvable:$true] %s259_s24 }
  0x15   : > { %p678_p0 = scmp.ge.s32.totalorder %s850_s29, 1  ;;  %s248_s30 = scalar_lea.sflag [#allocation4], %s247_s16 }
  0x16   : > { %s754_s9 = sshra.s32 %s258_s22, 4  ;;  %p758_p2 = pneg %p967_p13  ;;  %s755_s9 = int_to_ptr.hbm [resolvable:$true] %s754_s9 }
  0x17   : > { %s756_s10 = scalar_lea.hbm %s755_s9, 32  ;;  %s761_s19 = scalar_lea.hbm %s1116_s2, 64 }
  0x18   : > { %p757_p1 = scmp.ne.s32.totalorder %s755_s9, %s756_s10  ;;  %p762_p5 = scmp.lt.s32.totalorder %s755_s9, %s1116_s2 }
  0x19   : > { %p763_p7 = scmp.lt.s32.totalorder %s761_s19, %s756_s10 }
  0x1a   : > { %p759_p3 = pnand %p758_p2, %p757_p1 }
  0x1b   : > { %p764_p8 = por %p763_p7, %p762_p5 }
  0x1c   : > { %p760_p4 = pneg %p759_p3 }
  0x1e   : > { %p765_p10 = pnand %p764_p8, %p760_p4 }
  0x20   : > { %768 = shalt.err (!%p765_p10)
}
  0x21   : > { %s852_s16 = smov 512   ;;  %s853_s21 = smov 256  }
  0x22   : > { %s854_s23 = smov 16   ;;  %p281_p1 = scmp.lt.s32.totalorder %s850_s29, 3 }
  0x23   : > { %700 = dma.hbm_to_vmem [thread:$0]  (!%p967_p13), %s258_s22, 512, %s260_s24, %s248_s30, %s852_s16, %s853_s21, %s854_s23  }
  0x24   : > { %p282_p2 = pnand %p678_p0, %p281_p1 }
  0x25   : > { %s986_s17 = sand.u32 (!%p282_p2), 1, %s842_s27  }
  0x26   : > { %285 = sbr.rel (%p282_p2) target bundleno = 360 (0x168), region = 40  ;;  %s679_s9 = sshll.u32 (!%p282_p2), %s986_s17, 5 }
  0x27   : > { %s288_s10 = scalar_lea.sflag (!%p282_p2), [#allocation4], %s986_s17  ;;  %s992_s18 = scalar_lea.vmem (!%p282_p2), [#allocation3], %s679_s9 }
  0x2b   : > { %829 = dma.done.wait (%p945_p6), %s288_s10, 512  }
  0x2c   : > { %831 = vsyncadd (%p945_p6), %s288_s10, 4294966784  ;;  %v360_v0 = vld [vmem:[%s1115_s1] sm:$0xf]  ;;  %vm366_vm1 = vcmask 1040384   ;;  %vm368_vm2 = vcmask 1042434   ;;  %v855_v1 = vmov 0  }
  0x2d   : > { %vm361_vm0 = vcmp.ne.f32.partialorder %v360_v0, 0.0  ;;  %vm370_vm3 = vcmask 1041408   ;;  %vm372_vm4 = vcmask 1041409   ;;  %vm374_vm5 = vcmask 1043459   ;;  %v355_v14 = vld [vmem:[%s992_s18] sm:$0xff]  ;;  %v356_v15 = vld [vmem:[%s992_s18 + $0x8] sm:$0xff] }
  0x2e   : > { %v362_v2 = vsel %vm361_vm0, 1, %v855_v1  ;;  %vm376_vm6 = vcmask 1042433   ;;  %v357_v19 = vld [vmem:[%s992_s18 + $0x10] sm:$0xff]  ;;  %v358_v20 = vld [vmem:[%s992_s18 + $0x18] sm:$0xff]  ;;  %s1029_s13 = sld [smem:[#allocation2]]  ;;  %p339_p6 = scmp.lt.s32.totalorder %s923_s0, 1 }
  0x2f   : > { %v363_v3 = vrot.slane %v362_v2, 1  ;;  %v364_v4 = vrot.slane %v362_v2, 2  ;;  %v365_v5 = vrot.slane %v362_v2, 3  ;;  %s692_s12 = sshll.u32 %s923_s0, 4 }
  0x30   : > { %s340_s25 = scalar_select %p339_p6, %s923_s0, 1 }
  0x31   : > { %v367_v6 = vsel %vm366_vm1, %v362_v2, %v363_v3  ;;  %v369_v7 = vsel %vm368_vm2, %v364_v4, %v365_v5  ;;  %v373_v8 = vsel %vm372_vm4, %v362_v2, %v363_v3  ;;  %v375_v9 = vsel %vm374_vm5, %v364_v4, %v365_v5  ;;  %s517_s21 = scalar_lea.hbm %s1119_s5, %s692_s12  ;;  %s498_s0 = scalar_lea.sflag [#allocation5], %s986_s17 }
  0x32   : > { %v371_v10 = vsel %vm370_vm3, %v367_v6, %v369_v7  ;;  %v377_v11 = vsel %vm376_vm6, %v373_v8, %v375_v9  ;;  %s1034_s30 = sshll.u32 %s340_s25, 3  ;;  %vm490_vm1 = vcmask 7168  }
  0x33   : > { %v378_v12 = vrot.slane %v377_v11, 1  ;;  %vm379_vm7 = vcmp.ne.s32.totalorder %v371_v10, 0  ;;  %s342_s20 = scalar_lea.vmem %s1117_s3, %s1034_s30  ;;  %s350_s23 = scalar_lea.vmem %s1120_s6, %s1034_s30 }
  0x34   : > { %v381_v13 = vsel %vm379_vm7, 1, %v855_v1  ;;  %v400_v34 = vstv %s1029_s13  ;;  %v486_v45 = vld [vmem:[%s342_s20] sm:$0xff]  ;;  %s685_s10 = sadd.f32 -1.0, %s1029_s13  ;;  %s346_s24 = scalar_lea.vmem %s1118_s4, %s1034_s30 }
  0x35   : > { %vm380_vm8 = vcmp.ne.s32.totalorder %v378_v12, 0  ;;  %v383_v16 = vperm.slane %v381_v13, 0  ;;  %v384_v17 = vperm.slane %v381_v13, 1  ;;  %746 = vrcp.f32 %v400_v34  ;;  %s354_s19 = scalar_lea.vmem %s1121_s7, %s1034_s30  ;;  %s326_s30 = scalar_lea.vmem [#allocation6], %s679_s9 }
  0x36   : > { %v382_v18 = vsel %vm380_vm8, 1, %v855_v1  ;;  %vm406_vm13 = vweird.f32 %v400_v34  ;;  %v412_v39 = vand.u32 2147483648, %v400_v34  ;;  %v410_v41 = vand.u32 2147483647, %v400_v34  ;;  %s804_s13 = scalar_lea.hbm %s1119_s5, 64 }
  0x37   : > { %v385_v21 = vperm.slane %v382_v18, 0  ;;  %v386_v22 = vperm.slane %v382_v18, 1  ;;  %vm1005_vm9 = vcmp.eq.s32.totalorder %v383_v16, 1  ;;  %vm1009_vm10 = vcmp.eq.s32.totalorder %v384_v17, 1 }
  0x38   : > { %v391_v25 = vsel %vm1005_vm9, %v355_v14, 0.0  ;;  %v392_v26 = vsel %vm1009_vm10, %v356_v15, 0.0  ;;  %v413_v42 = vor.u32 1.1754944e-38, %v412_v39  ;;  %vm411_vm0 = vcmp.eq.f32.partialorder %v410_v41, 8.507059e+37 }
  0x39   : > { %vm1017_vm11 = vcmp.eq.s32.totalorder %v385_v21, 1  ;;  %vm1021_vm12 = vcmp.eq.s32.totalorder %v386_v22, 1  ;;  %v395_v29 = vadd.f32 %v392_v26, %v391_v25  ;;  %v487_v47 = vmul.f32 0.9, %v486_v45  ;;  %v492_v21 = vld [vmem:[%s346_s24] sm:$0xff] }
  0x3a   : > { %v393_v30 = vsel %vm1017_vm11, %v357_v19, 0.0  ;;  %v394_v31 = vsel %vm1021_vm12, %v358_v20, 0.0  ;;  %v434_v2 = vstv %s685_s10  ;;  %v493_v25 = vmul.f32 0.9, %v492_v21  ;;  %s520_s10 = sshll.u32 %s517_s21, 4  ;;  %s521_s10 = int_to_ptr.hbm [resolvable:$true] %s520_s10 }
  0x3b   : > { %v396_v32 = vadd.f32 %v395_v29, %v393_v30  ;;  %v747_v35 = vpop.eup %746  ;;  %748 = vrcp.f32 %v434_v2  ;;  %vm440_vm2 = vweird.f32 %v434_v2  ;;  %v446_v7 = vand.u32 2147483648, %v434_v2  ;;  %s798_s9 = sshra.s32 %s521_s10, 4  ;;  %s799_s9 = int_to_ptr.hbm [resolvable:$true] %s798_s9 }
  0x3c   : > { %v402_v36 = vmul.f32 %v747_v35, %v400_v34  ;;  %vm407_vm14 = vweird.f32 %v747_v35  ;;  %v444_v9 = vand.u32 2147483647, %v434_v2  ;;  %s800_s18 = scalar_lea.hbm %s799_s9, 32  ;;  %p805_p4 = scmp.lt.s32.totalorder %s799_s9, %s1119_s5 }
  0x3d   : > { %v397_v33 = vadd.f32 %v396_v32, %v394_v31  ;;  %vm408_vm15 = vmor %vm406_vm13, %vm407_vm14  ;;  %v447_v10 = vor.u32 1.1754944e-38, %v446_v7  ;;  %p801_p13 = scmp.ne.s32.totalorder %s799_s9, %s800_s18  ;;  %p806_p5 = scmp.lt.s32.totalorder %s804_s13, %s800_s18 }
  0x3e   : > { %v403_v37 = vsub.f32 1.0, %v402_v36  ;;  %vm445_vm5 = vcmp.eq.f32.partialorder %v444_v9, 8.507059e+37 }
  0x3f   : > { %398 = vadd.xlane.f32.xlu0 %v397_v33  ;;  %p802_p0 = pnand %p801_p13, %p952_p11  ;;  %p807_p7 = por %p806_p5, %p805_p4 }
  0x40   : > { %v404_v38 = vmul.f32 %v747_v35, %v403_v37 }
  0x41   : > { %v749_v3 = vpop.eup %748  ;;  %p803_p3 = pneg %p802_p0 }
  0x42   : > { %v405_v40 = vadd.f32 %v747_v35, %v404_v38  ;;  %v436_v4 = vmul.f32 %v749_v3, %v434_v2  ;;  %vm441_vm3 = vweird.f32 %v749_v3 }
  0x43   : > { %vm442_vm4 = vmor %vm440_vm2, %vm441_vm3  ;;  %p808_p8 = pnand %p807_p7, %p803_p3 }
  0x44   : > { %v409_v43 = vsel %vm408_vm15, %v747_v35, %v405_v40  ;;  %v437_v5 = vsub.f32 1.0, %v436_v4 }
  0x45   : > { %v414_v44 = vsel %vm411_vm0, %v413_v42, %v409_v43 }
  0x46   : > { %v438_v6 = vmul.f32 %v749_v3, %v437_v5 }
  0x48   : > { %v439_v8 = vadd.f32 %v749_v3, %v438_v6 }
  0x4a   : > { %v443_v11 = vsel %vm442_vm4, %v749_v3, %v439_v8 }
  0x4b   : > { %v448_v12 = vsel %vm445_vm5, %v447_v10, %v443_v11 }
  0xb2   : > { %v399_v46 = vpop.xlane.xlu0 %398 }
  0xb3   : > { %v415_v48 = vmul.f32 %v414_v44, %v399_v46 }
  0xb5   : > { %v488_v49 = vmul.f32 0.1, %v415_v48  ;;  %v1040_v50 = vsub.f32 %v355_v14, %v415_v48  ;;  %v1042_v51 = vsub.f32 %v356_v15, %v415_v48  ;;  %v1044_v52 = vsub.f32 %v357_v19, %v415_v48 }
  0xb6   : > { %v1050_v53 = vsub.f32 %v358_v20, %v415_v48 }
  0xb7   : > { %v489_v54 = vadd.f32 %v488_v49, %v487_v47  ;;  %v420_v55 = vsel %vm1005_vm9, %v1040_v50, 0.0  ;;  %v421_v56 = vsel %vm1009_vm10, %v1042_v51, 0.0  ;;  %v422_v57 = vsel %vm1017_vm11, %v1044_v52, 0.0 }
  0xb8   : > { %v424_v58 = vmul.f32 %v420_v55, %v420_v55  ;;  %v425_v59 = vmul.f32 %v421_v56, %v421_v56  ;;  %v423_v60 = vsel %vm1021_vm12, %v1050_v53, 0.0  ;;  %v426_v61 = vmul.f32 %v422_v57, %v422_v57 }
  0xb9   : > { %491 = vst.msk [vmem:[%s350_s23] sm:$0xff] %vm490_vm1, %v489_v54  ;;  %v427_v63 = vmul.f32 %v423_v60, %v423_v60  ;;  %s518_s23 = sshll.u32 %s326_s30, 4  ;;  %s519_s23 = int_to_ptr.vmem [resolvable:$true] %s518_s23 }
  0xba   : > { %v428_v62 = vadd.f32 %v425_v59, %v424_v58 }
  0xbc   : > { %v429_v0 = vadd.f32 %v428_v62, %v426_v61 }
  0xbe   : > { %v430_v1 = vadd.f32 %v429_v0, %v427_v63 }
  0xc0   : > { %431 = vadd.xlane.f32.xlu0 %v430_v1 }
 0x133   : > { %v432_v13 = vpop.xlane.xlu0 %431 }
 0x134   : > { %v449_v14 = vmul.f32 %v448_v12, %v432_v13 }
 0x136   : > { %750 = vrsqrt.f32 %v449_v14  ;;  %vm457_vm6 = vcmp.eq.f32.partialorder %v449_v14, inf  ;;  %v460_v23 = vand.u32 2147483648, %v449_v14  ;;  %vm459_vm7 = vcmp.eq.f32.partialorder %v449_v14, 0.0 }
 0x13c   : > { %v751_v15 = vpop.eup %750 }
 0x13d   : > { %v451_v16 = vmul.f32 %v751_v15, %v449_v14 }
 0x13f   : > { %v452_v17 = vmul.f32 %v751_v15, %v451_v16 }
 0x141   : > { %v453_v18 = vmul.f32 0.5, %v452_v17 }
 0x143   : > { %v454_v19 = vsub.f32 1.5, %v453_v18 }
 0x145   : > { %v455_v20 = vmul.f32 %v751_v15, %v454_v19 }
 0x147   : > { %v456_v22 = vmul.f32 %v455_v20, %v449_v14 }
 0x149   : > { %v458_v24 = vsel %vm457_vm6, %v449_v14, %v456_v22 }
 0x14a   : > { %v461_v26 = vsel %vm459_vm7, %v460_v23, %v458_v24 }
 0x14b   : > { %v462_v27 = vadd.f32 1e-05, %v461_v26  ;;  %v494_v28 = vmul.f32 0.1, %v461_v26 }
 0x14d   : > { %752 = vrcp.f32 %v462_v27  ;;  %v495_v29 = vadd.f32 %v494_v28, %v493_v25  ;;  %v474_v33 = vand.u32 2147483648, %v462_v27  ;;  %v472_v35 = vand.u32 2147483647, %v462_v27 }
 0x14e   : > { %vm468_vm9 = vweird.f32 %v462_v27 }
 0x14f   : > { %496 = vst.msk [vmem:[%s354_s19] sm:$0xff] %vm490_vm1, %v495_v29  ;;  %v475_v37 = vor.u32 1.1754944e-38, %v474_v33  ;;  %vm473_vm11 = vcmp.eq.f32.partialorder %v472_v35, 8.507059e+37 }
 0x153   : > { %v753_v30 = vpop.eup %752 }
 0x154   : > { %v464_v31 = vmul.f32 %v753_v30, %v462_v27  ;;  %vm469_vm8 = vweird.f32 %v753_v30 }
 0x155   : > { %vm470_vm10 = vmor %vm468_vm9, %vm469_vm8 }
 0x156   : > { %v465_v32 = vsub.f32 1.0, %v464_v31 }
 0x158   : > { %v466_v34 = vmul.f32 %v753_v30, %v465_v32 }
 0x15a   : > { %v467_v36 = vadd.f32 %v753_v30, %v466_v34 }
 0x15c   : > { %v471_v38 = vsel %vm470_vm10, %v753_v30, %v467_v36 }
 0x15d   : > { %v476_v39 = vsel %vm473_vm11, %v475_v37, %v471_v38 }
 0x15e   : > { %v478_v40 = vmul.f32 %v476_v39, %v1040_v50  ;;  %v479_v41 = vmul.f32 %v476_v39, %v1042_v51  ;;  %v480_v42 = vmul.f32 %v476_v39, %v1044_v52  ;;  %v481_v43 = vmul.f32 %v476_v39, %v1050_v53 }
 0x160   : > { %482 = vst [vmem:[%s326_s30] sm:$0xff] %v478_v40 }
 0x161   : > { %483 = vst [vmem:[%s326_s30 + $0x8] sm:$0xff] %v479_v41 }
 0x162   : > { %484 = vst [vmem:[%s326_s30 + $0x10] sm:$0xff] %v480_v42 }
 0x163   : > { %485 = vst [vmem:[%s326_s30 + $0x18] sm:$0xff] %v481_v43 }
 0x164   : > { %811 = shalt.err (!%p808_p8)
}
 0x165   : > { %s856_s17 = smov 256   ;;  %s857_s12 = smov 512  }
 0x166   : > { %s858_s20 = smov 16  }
 0x167   : > { %695 = dma.vmem_to_hbm [thread:$0]  (%p952_p11), %s519_s23, 512, %s521_s10, %s498_s0, %s856_s17, %s857_s12, %s858_s20  }
 0x168 PF: > { %s541_s16 = sand.u32 1, %s838_s26   ;;  %p702_p10 = pnand %p674_p9, %p956_p12 }
 0x169   : > { %s542_s21 = scalar_lea.sflag [#allocation5], %s541_s16 }
 0x16a   : > { %p703_p1 = pneg %p702_p10 }
 0x16c   : > { %833 = dma.done.wait (%p703_p1), %s542_s21, 512  }
 0x16d   : > { %835 = vsyncadd (%p703_p1), %s542_s21, 4294966784  ;;  %p22_p2 = scmp.ge.s32.totalorder %s927_s8, 4   ;;  %s1135_s26 = smov %s842_s27 }
 0x16e   : > { %s1136_s27 = smov %s846_s28  ;;  %s1137_s28 = smov %s939_s11 }
 0x16f   : > { %s1138_s29 = smov %s927_s8  ;;  %24 = sbr.rel (!%p22_p2) target bundleno = 7 (0x7), region = 115 }
 0x174   :  { %562 = vsyncpa [#allocation4], 1 }
 0x175   :  { %564 = vsyncpa [#allocation4 + $0x1], 1 }
 0x176   :  { %565 = vsyncpa [#allocation5], 1 }
 0x177   :  { %567 = vsyncpa [#allocation5 + $0x1], 1 }

</bundles_post_ra>
